<compile_context>
chip_gen: v6e
topology: v6e:2x2x1
jax: 0.10.0
libtpu: 0.0.40
codegen_flags: <defaults>
</compile_context>

<pallas_src>
import jax
import jax.numpy as jnp
from jax.experimental import pallas as pl
from jax.experimental.pallas import tpu as pltpu


def attention_kernel(last_ref, x_ref, w_ref, b_ref, o_ref):
    # last_ref: (TB, H)  x_ref: (TB, T, H)  w_ref: (H, H)  b_ref: (1, H)  o_ref: (TB, 1, H)
    last = last_ref[...]
    x = x_ref[...]
    w = w_ref[...]
    b = b_ref[...]

    # nn.Linear: query = last @ W.T + b.  Contract directly over W's in-feature axis
    # (axis 1) so no transpose is materialized in-kernel.  2-D matmul -> MXU.
    query = jax.lax.dot_general(
        last, w, (((1,), (1,)), ((), ())),
        preferred_element_type=jnp.float32,
    ) + b.astype(jnp.float32)                                    # (TB, H) f32

    # energy[b, t] = sum_h x[b, t, h] * query[b, h]
    # Batched MXU contraction (flash-attention pattern with query length 1).
    q3 = query.astype(x.dtype)[:, None, :]                       # (TB, 1, H)
    energy = jnp.einsum(
        "bqh,bth->bqt", q3, x, preferred_element_type=jnp.float32
    )                                                            # (TB, 1, T) f32

    # Softmax over the sequence axis (last axis), in f32.
    m = jnp.max(energy, axis=2, keepdims=True)
    p = jnp.exp(energy - m)
    inv_denom = pl.reciprocal(jnp.sum(p, axis=2, keepdims=True), approx=True)
    weights = p * inv_denom                                      # (TB, 1, T)

    # context[b, h] = sum_t weights[b, t] * x[b, t, h]   (batched MXU contraction)
    context = jnp.einsum(
        "bqt,bth->bqh", weights.astype(x.dtype), x,
        preferred_element_type=jnp.float32,
    )                                                            # (TB, 1, H) f32

    o_ref[...] = context.astype(o_ref.dtype)


def _pick_batch_tile(B, T, H, itemsize, vmem_budget_bytes=8 * 1024 * 1024):
    """Largest batch tile that divides B, is sublane-aligned (multiple of 8), and keeps
    the double-buffered (TB, T, H) activation block inside a conservative VMEM budget
    that fits the default scoped limit on v5e/v6e/v7x."""
    bytes_per_batch_row = 2 * T * H * itemsize  # x block, double-buffered
    cap = max(8, vmem_budget_bytes // max(bytes_per_batch_row, 1))
    tb = min(B, cap)
    tb -= tb % 8
    while tb >= 8 and B % tb != 0:
        tb -= 8
    if tb < 8:
        # Tiny / awkward batch: single block over B (block == full dim is always legal).
        tb = B
    return tb


def attention_forward(lstm_output, w, b):
    B, T, H = lstm_output.shape
    tb = _pick_batch_tile(B, T, H, jnp.dtype(lstm_output.dtype).itemsize)
    grid = (B // tb,)

    # Free XLA slice outside the kernel -> kernel never gathers row T-1 from the 3-D block.
    last = lstm_output[:, -1, :]                                 # (B, H)
    b2d = b.reshape(1, H)

    out3 = pl.pallas_call(
        attention_kernel,
        out_shape=jax.ShapeDtypeStruct((B, 1, H), lstm_output.dtype),
        grid=grid,
        in_specs=[
            pl.BlockSpec((tb, H), lambda i: (i, 0)),             # last timestep rows
            pl.BlockSpec((tb, T, H), lambda i: (i, 0, 0)),       # full sequence block
            pl.BlockSpec((H, H), lambda i: (0, 0)),              # W (grid-invariant)
            pl.BlockSpec((1, H), lambda i: (0, 0)),              # bias (grid-invariant)
        ],
        out_specs=pl.BlockSpec((tb, 1, H), lambda i: (i, 0, 0)),
        compiler_params=pltpu.CompilerParams(
            dimension_semantics=("parallel",),                   # shards over 2 TCs on v7x
        ),
    )(last, lstm_output, w, b2d)

    return out3.reshape(B, H)


def attention_reference(lstm_output, w, b):
    # Pure-JAX mirror of the PyTorch forward, for a correctness check.
    query = lstm_output[:, -1] @ w.T + b                              # (B, H)
    energy = jnp.einsum("bth,bh->bt", lstm_output, query)             # (B, T)
    weights = jax.nn.softmax(energy, axis=1)                          # (B, T)
    context = jnp.einsum("bt,bth->bh", weights, lstm_output)          # (B, H)
    return context


if __name__ == "__main__":
    # Small batch/seq; hidden_size = 256 as in the module (also lane-dense: 256 % 128 == 0).
    B, T, H = 2, 8, 256

    key = jax.random.PRNGKey(0)
    kx, kw, kb = jax.random.split(key, 3)

    lstm_output = jax.random.normal(kx, (B, T, H), dtype=jnp.float32)
    # Deterministic nn.Linear-style init (uniform in +/- 1/sqrt(H)).
    bound = 1.0 / jnp.sqrt(jnp.float32(H))
    w = jax.random.uniform(kw, (H, H), minval=-bound, maxval=bound, dtype=jnp.float32)
    b = jax.random.uniform(kb, (H,), minval=-bound, maxval=bound, dtype=jnp.float32)

    fwd = jax.jit(attention_forward)
    out = jax.block_until_ready(fwd(lstm_output, w, b))

    ref = attention_reference(lstm_output, w, b)
    assert out.shape == (B, H)
    # approx=True softmax reciprocal (EUP vrcp) perturbs results by ~2^-12 relative at most.
    assert jnp.allclose(out, ref, atol=2e-3, rtol=2e-3), float(jnp.max(jnp.abs(out - ref)))

    print("KERNEL_OK")
</pallas_src>

<mosaic_0001>
module attributes {stable_mosaic.version = 11 : i64} {
  func.func @attention_kernel(%arg0: i32, %arg1: memref<2x256xf32, #tpu.memory_space<vmem>>, %arg2: memref<2x8x256xf32, #tpu.memory_space<vmem>>, %arg3: memref<256x256xf32, #tpu.memory_space<vmem>>, %arg4: memref<1x256xf32, #tpu.memory_space<vmem>>, %arg5: memref<2x1x256xf32, #tpu.memory_space<vmem>>) attributes {dimension_semantics = [#tpu.dimension_semantics<parallel>], iteration_bounds = array<i64: 1>, scalar_prefetch = 0 : i64, scratch_operands = 0 : i64, tpu.core_type = #tpu.core_type<tc>, window_params = [{transform_indices = @transform_0, window_bounds = array<i64: 2, 256>}, {transform_indices = @transform_1, window_bounds = array<i64: 2, 8, 256>}, {pipeline_mode = #tpu.pipeline_mode<synchronous>, transform_indices = @transform_2, window_bounds = array<i64: 256, 256>}, {pipeline_mode = #tpu.pipeline_mode<synchronous>, transform_indices = @transform_3, window_bounds = array<i64: 1, 256>}, {transform_indices = @transform_4, window_bounds = array<i64: 2, 1, 256>}]} {
    %c0 = arith.constant 0 : index
    %c0_0 = arith.constant 0 : index
    %0 = vector.load %arg1[%c0, %c0_0] : memref<2x256xf32, #tpu.memory_space<vmem>>, vector<2x256xf32>
    %c0_1 = arith.constant 0 : index
    %c0_2 = arith.constant 0 : index
    %c0_3 = arith.constant 0 : index
    %1 = vector.load %arg2[%c0_1, %c0_2, %c0_3] : memref<2x8x256xf32, #tpu.memory_space<vmem>>, vector<2x8x256xf32>
    %c0_4 = arith.constant 0 : index
    %c0_5 = arith.constant 0 : index
    %2 = vector.load %arg3[%c0_4, %c0_5] : memref<256x256xf32, #tpu.memory_space<vmem>>, vector<256x256xf32>
    %c0_6 = arith.constant 0 : index
    %c0_7 = arith.constant 0 : index
    %3 = vector.load %arg4[%c0_6, %c0_7] : memref<1x256xf32, #tpu.memory_space<vmem>>, vector<1x256xf32>
    %cst = arith.constant dense<0.000000e+00> : vector<2x256xf32>
    %4 = tpu.matmul %0, %2, %cst {dimension_numbers = #tpu.dot_dimension_numbers<[1], [1], [0], [0], [0, 0, 1, 0], [], []>} : vector<2x256xf32>, vector<256x256xf32>, vector<2x256xf32> -> vector<2x256xf32>
    %5 = vector.broadcast %3 : vector<1x256xf32> to vector<2x256xf32>
    %6 = arith.addf %4, %5 : vector<2x256xf32>
    %7 = vector.shape_cast %6 : vector<2x256xf32> to vector<2x1x256xf32>
    "tpu.trace_start"() <{level = 10 : i32, message = "bqh,bth->bqt"}> : () -> ()
    %cst_8 = arith.constant dense<0.000000e+00> : vector<2x1x8xf32>
    %8 = tpu.matmul %7, %1, %cst_8 {dimension_numbers = #tpu.dot_dimension_numbers<[2], [2], [1], [1], [0, 0, 0, 1, 1, 1], [0], [0]>} : vector<2x1x256xf32>, vector<2x8x256xf32>, vector<2x1x8xf32> -> vector<2x1x8xf32>
    "tpu.trace_stop"() : () -> ()
    %cst_9 = arith.constant dense<0xFF800000> : vector<2x1xf32>
    %9 = vector.multi_reduction <maximumf>, %8, %cst_9 [2] : vector<2x1x8xf32> to vector<2x1xf32>
    %10 = vector.shape_cast %9 : vector<2x1xf32> to vector<2x1x1xf32>
    %11 = vector.broadcast %10 : vector<2x1x1xf32> to vector<2x1x8xf32>
    %12 = arith.subf %8, %11 : vector<2x1x8xf32>
    %13 = math.exp %12 : vector<2x1x8xf32>
    %cst_10 = arith.constant dense<0.000000e+00> : vector<2x1xf32>
    %14 = vector.multi_reduction <add>, %13, %cst_10 [2] : vector<2x1x8xf32> to vector<2x1xf32>
    %15 = vector.shape_cast %14 : vector<2x1xf32> to vector<2x1x1xf32>
    %16 = tpu.reciprocal %15 {approx = true} : vector<2x1x1xf32> -> vector<2x1x1xf32>
    %17 = vector.broadcast %16 : vector<2x1x1xf32> to vector<2x1x8xf32>
    %18 = arith.mulf %13, %17 : vector<2x1x8xf32>
    "tpu.trace_start"() <{level = 10 : i32, message = "bqt,bth->bqh"}> : () -> ()
    %cst_11 = arith.constant dense<0.000000e+00> : vector<2x1x256xf32>
    %19 = tpu.matmul %18, %1, %cst_11 {dimension_numbers = #tpu.dot_dimension_numbers<[2], [1], [1], [2], [0, 0, 0, 1, 1, 2], [0], [0]>} : vector<2x1x8xf32>, vector<2x8x256xf32>, vector<2x1x256xf32> -> vector<2x1x256xf32>
    "tpu.trace_stop"() : () -> ()
    %c0_12 = arith.constant 0 : index
    %c0_13 = arith.constant 0 : index
    %c0_14 = arith.constant 0 : index
    %20 = vector.load %arg5[%c0_12, %c0_13, %c0_14] : memref<2x1x256xf32, #tpu.memory_space<vmem>>, vector<2x1x256xf32>
    tpu.vector_store %arg5[%c0_12, %c0_13, %c0_14], %19 {strides = array<i32>} : memref<2x1x256xf32, #tpu.memory_space<vmem>>, vector<2x1x256xf32>,
    return
  }
  func.func @transform_0(%arg0: i32) -> (i32, i32) {
    %c0_i32 = arith.constant 0 : i32
    %c0_i32_0 = arith.constant 0 : i32
    return %arg0, %c0_i32 : i32, i32
  }
  func.func @transform_1(%arg0: i32) -> (i32, i32, i32) {
    %c0_i32 = arith.constant 0 : i32
    %c0_i32_0 = arith.constant 0 : i32
    %c0_i32_1 = arith.constant 0 : i32
    return %arg0, %c0_i32, %c0_i32_0 : i32, i32, i32
  }
  func.func @transform_2(%arg0: i32) -> (i32, i32) {
    %c0_i32 = arith.constant 0 : i32
    %c0_i32_0 = arith.constant 0 : i32
    %c0_i32_1 = arith.constant 0 : i32
    return %c0_i32, %c0_i32_0 : i32, i32
  }
  func.func @transform_3(%arg0: i32) -> (i32, i32) {
    %c0_i32 = arith.constant 0 : i32
    %c0_i32_0 = arith.constant 0 : i32
    %c0_i32_1 = arith.constant 0 : i32
    return %c0_i32, %c0_i32_0 : i32, i32
  }
  func.func @transform_4(%arg0: i32) -> (i32, i32, i32) {
    %c0_i32 = arith.constant 0 : i32
    %c0_i32_0 = arith.constant 0 : i32
    %c0_i32_1 = arith.constant 0 : i32
    return %arg0, %c0_i32, %c0_i32_0 : i32, i32, i32
  }
}

</mosaic_0001>

<bundles_post_ra>
// kernel: attention_forward.1
= control target key start
LH: loop header
LB: loop body
LE: loop exit
PB: predicated region body
PF: predicated region fallthrough
CT: control target
= control target key end

     0   :  { %9 = vsyncpa [#allocation3], 0  ;;  %s743_s0 = inlined_call_operand.vmem [shape: f32[2,256], index: 0, kind: input, shape index: {}]   ;;  %s744_s1 = inlined_call_operand.hbm [shape: f32[2,8,256], index: 1, kind: input, shape index: {}]   ;;  %s745_s2 = inlined_call_operand.hbm [shape: f32[256,256], index: 2, kind: input, shape index: {}]   ;;  %s746_s3 = inlined_call_operand.vmem [shape: f32[1,256], index: 3, kind: input, shape index: {}]   ;;  %s747_s4 = inlined_call_operand.vmem [shape: f32[2,1,256], index: 4, kind: output, shape index: {}]  }
   0x1   :  { %10 = vsyncpa [#allocation5], 0  ;;  %s674_s15 = smov [#allocation2]  }
   0x2   :  { %s18_s16 = sshll.u32 %s674_s15, 4  ;;  %s19_s16 = int_to_ptr.vmem [resolvable:$true] %s18_s16 }
   0x3   :  { %s638_s17 = scalar_lea.vmem %s19_s16, 512  ;;  %p643_p1 = scmp.lt.s32.totalorder %s19_s16, %s19_s16 }
   0x4   :  { %p639_p0 = scmp.ne.s32.totalorder %s19_s16, %s638_s17  ;;  %p644_p2 = scmp.lt.s32.totalorder %s638_s17, %s638_s17 }
   0x6   :  { %p645_p3 = por %p644_p2, %p643_p1 }
   0x8   :  { %p646_p4 = pnand %p645_p3, %p639_p0 }
   0xa   :  { %649 = shalt.err (!%p646_p4)
}
   0xb   :  { %s675_s18 = smov 256   ;;  %s676_s19 = smov 16  }
   0xc   :  { %24 = dma.hbm_to_vmem [thread:$0]  %s744_s1, 512, %s19_s16, [#allocation3], %s675_s18, %s675_s18, %s676_s19  }
   0xd   :  { %s677_s22 = smov [#allocation4]  }
   0xe   :  { %s30_s23 = sshll.u32 %s677_s22, 4  ;;  %s31_s23 = int_to_ptr.vmem [resolvable:$true] %s30_s23 }
   0xf   :  { %s658_s24 = scalar_lea.vmem %s31_s23, 8192  ;;  %p663_p6 = scmp.lt.s32.totalorder %s31_s23, %s31_s23 }
  0x10   :  { %p659_p5 = scmp.ne.s32.totalorder %s31_s23, %s658_s24  ;;  %p664_p7 = scmp.lt.s32.totalorder %s658_s24, %s658_s24 }
  0x12   :  { %p665_p8 = por %p664_p7, %p663_p6 }
  0x14   :  { %p666_p9 = pnand %p665_p8, %p659_p5 }
  0x16   :  { %669 = shalt.err (!%p666_p9)
}
  0x17   :  { %36 = dma.hbm_to_vmem [thread:$0]  %s745_s2, 8192, %s31_s23, [#allocation5], %s675_s18, %s675_s18, %s676_s19  }
  0x18   :  { %670 = dma.done.wait [#allocation3], 512  }
  0x19   :  { %671 = vsyncadd [#allocation3], 4294966784 }
  0x1a   :  { %672 = dma.done.wait [#allocation5], 8192  }
  0x1b   :  { %673 = vsyncadd [#allocation5], 4294959104  ;;  %v81_v0 = vld [vmem:[#allocation4 + $0xf8] sm:$0xff]  ;;  %v80_v1 = vld [vmem:[#allocation4 + $0xf0] sm:$0xff]  ;;  %vm393_vm0 = vcmask 57344   ;;  %vm416_vm1 = vcmask 64512  }
  0x1c   :  { %v79_v2 = vld [vmem:[#allocation4 + $0xe8] sm:$0xff]  ;;  %137 = vmatprep.subr.mxu0 %v81_v0  ;;  %v78_v3 = vld [vmem:[#allocation4 + $0xe0] sm:$0xff]  ;;  %v77_v4 = vld [vmem:[#allocation4 + $0xd8] sm:$0xff] }
  0x1d   :  { %138 = vmatpush1.xpose.msra.mxu0 %v80_v1  ;;  %v76_v5 = vld [vmem:[#allocation4 + $0xd0] sm:$0xff]  ;;  %v75_v6 = vld [vmem:[#allocation4 + $0xc8] sm:$0xff]  ;;  %v74_v7 = vld [vmem:[#allocation4 + $0xc0] sm:$0xff] }
  0x1e   :  { %139 = vmatprep.subr.mxu0 %v79_v2  ;;  %v73_v8 = vld [vmem:[#allocation4 + $0xb8] sm:$0xff]  ;;  %v72_v9 = vld [vmem:[#allocation4 + $0xb0] sm:$0xff]  ;;  %v71_v10 = vld [vmem:[#allocation4 + $0xa8] sm:$0xff] }
  0x1f   :  { %v70_v11 = vld [vmem:[#allocation4 + $0xa0] sm:$0xff]  ;;  %v69_v12 = vld [vmem:[#allocation4 + $0x98] sm:$0xff]  ;;  %v68_v15 = vld [vmem:[#allocation4 + $0x90] sm:$0xff] }
  0x20   :  { %v714_v13 = vld.sshfl [vmem:[%s743_s0] sm:$0x33 pattern:$0x76325410]  ;;  %v67_v16 = vld [vmem:[#allocation4 + $0x88] sm:$0xff]  ;;  %v65_v18 = vld [vmem:[#allocation4 + $0x78] sm:$0xff] }
  0x21   :  { %140 = vmatpush1.xpose.msra.mxu0 %v78_v3  ;;  %v134_v14 = vcombine.high %v714_v13, %v714_v13  ;;  %v66_v17 = vld [vmem:[#allocation4 + $0x80] sm:$0xff]  ;;  %v64_v19 = vld [vmem:[#allocation4 + $0x70] sm:$0xff]  ;;  %v63_v20 = vld [vmem:[#allocation4 + $0x68] sm:$0xff] }
  0x22   :  { %141 = vmatprep.subr.mxu0 %v77_v4  ;;  %v62_v21 = vld [vmem:[#allocation4 + $0x60] sm:$0xff]  ;;  %v61_v22 = vld [vmem:[#allocation4 + $0x58] sm:$0xff]  ;;  %v60_v23 = vld [vmem:[#allocation4 + $0x50] sm:$0xff] }
  0x23   :  { %201 = vmatprep.mubr.f32.mxu0 %v134_v14  ;;  %v59_v24 = vld [vmem:[#allocation4 + $0x48] sm:$0xff]  ;;  %v58_v25 = vld [vmem:[#allocation4 + $0x40] sm:$0xff]  ;;  %v57_v26 = vld [vmem:[#allocation4 + $0x38] sm:$0xff] }
  0x24   :  { %v56_v27 = vld [vmem:[#allocation4 + $0x30] sm:$0xff]  ;;  %v55_v28 = vld [vmem:[#allocation4 + $0x28] sm:$0xff]  ;;  %v54_v29 = vld [vmem:[#allocation4 + $0x20] sm:$0xff] }
  0x25   :  { %142 = vmatpush1.xpose.msra.mxu0 %v76_v5  ;;  %v53_v30 = vld [vmem:[#allocation4 + $0x18] sm:$0xff]  ;;  %v52_v31 = vld [vmem:[#allocation4 + $0x10] sm:$0xff]  ;;  %v51_v32 = vld [vmem:[#allocation4 + $0x8] sm:$0xff]  ;;  %v116_v5 = vlaneseq }
  0x26   :  { %143 = vmatprep.subr.mxu0 %v75_v6  ;;  %v50_v33 = vld [vmem:[#allocation4] sm:$0xff]  ;;  %v113_v34 = vld [vmem:[#allocation4 + $0x1f8] sm:$0xff]  ;;  %v112_v35 = vld [vmem:[#allocation4 + $0x1f0] sm:$0xff] }
  0x27   :  { %v111_v36 = vld [vmem:[#allocation4 + $0x1e8] sm:$0xff]  ;;  %v110_v37 = vld [vmem:[#allocation4 + $0x1e0] sm:$0xff]  ;;  %v109_v38 = vld [vmem:[#allocation4 + $0x1d8] sm:$0xff]  ;;  %v117_v6 = vshrl.u32 %v116_v5, 7  ;;  %vm603_vm2 = vcmp.lt.s32.totalorder %v116_v5, 256 }
  0x28   :  { %v108_v39 = vld [vmem:[#allocation4 + $0x1d0] sm:$0xff]  ;;  %v107_v40 = vld [vmem:[#allocation4 + $0x1c8] sm:$0xff]  ;;  %v106_v41 = vld [vmem:[#allocation4 + $0x1c0] sm:$0xff] }
  0x29   :  { %144 = vmatpush1.xpose.msra.mxu0 %v74_v7  ;;  %v105_v42 = vld [vmem:[#allocation4 + $0x1b8] sm:$0xff]  ;;  %v104_v43 = vld [vmem:[#allocation4 + $0x1b0] sm:$0xff]  ;;  %v103_v44 = vld [vmem:[#allocation4 + $0x1a8] sm:$0xff]  ;;  %v118_v7 = vsub.s32 0, %v117_v6 }
  0x2a   :  { %145 = vmatprep.subr.mxu0 %v73_v8  ;;  %v102_v45 = vld [vmem:[#allocation4 + $0x1a0] sm:$0xff]  ;;  %v101_v46 = vld [vmem:[#allocation4 + $0x198] sm:$0xff]  ;;  %v100_v47 = vld [vmem:[#allocation4 + $0x190] sm:$0xff]  ;;  %v678_v8 = vmov 1966171168  }
  0x2b   :  { %v99_v48 = vld [vmem:[#allocation4 + $0x188] sm:$0xff]  ;;  %v98_v49 = vld [vmem:[#allocation4 + $0x180] sm:$0xff]  ;;  %v97_v50 = vld [vmem:[#allocation4 + $0x178] sm:$0xff] }
  0x2c   :  { %v96_v51 = vld [vmem:[#allocation4 + $0x170] sm:$0xff]  ;;  %v95_v52 = vld [vmem:[#allocation4 + $0x168] sm:$0xff]  ;;  %v94_v53 = vld [vmem:[#allocation4 + $0x160] sm:$0xff] }
  0x2d   :  { %146 = vmatpush1.xpose.msra.mxu0 %v72_v9  ;;  %v93_v54 = vld [vmem:[#allocation4 + $0x158] sm:$0xff]  ;;  %v92_v55 = vld [vmem:[#allocation4 + $0x150] sm:$0xff]  ;;  %v91_v56 = vld [vmem:[#allocation4 + $0x148] sm:$0xff]  ;;  %v212_v9 = vunpack.c.l.s4 %v678_v8 }
  0x2e   :  { %147 = vmatprep.subr.mxu0 %v71_v10  ;;  %v90_v57 = vld [vmem:[#allocation4 + $0x140] sm:$0xff]  ;;  %v89_v58 = vld [vmem:[#allocation4 + $0x138] sm:$0xff]  ;;  %v88_v59 = vld [vmem:[#allocation4 + $0x130] sm:$0xff]  ;;  %v122_v10 = vsub.s32 1, %v117_v6 }
  0x2f   :  { %v87_v60 = vld [vmem:[#allocation4 + $0x128] sm:$0xff]  ;;  %v86_v61 = vld [vmem:[#allocation4 + $0x120] sm:$0xff]  ;;  %v85_v62 = vld [vmem:[#allocation4 + $0x118] sm:$0xff]  ;;  %v213_v14 = vunpack.c.0.s8 %v212_v9 }
  0x30   :  { %v84_v63 = vld [vmem:[#allocation4 + $0x110] sm:$0xff]  ;;  %v83_v0 = vld [vmem:[#allocation4 + $0x108] sm:$0xff]  ;;  %v82_v1 = vld [vmem:[#allocation4 + $0x100] sm:$0xff] }
  0x31   :  { %148 = vmatpush1.xpose.msra.mxu0 %v70_v11  ;;  %v47_v2 = vld [vmem:[#allocation2 + $0x8] sm:$0xff]  ;;  %v46_v3 = vld [vmem:[#allocation2] sm:$0xff]  ;;  %v49_v4 = vld [vmem:[#allocation2 + $0x18] sm:$0xff] }
  0x32   :  { %149 = vmatprep.subr.mxu0 %v69_v12  ;;  %273 = vmatprep.subr.mxu1 %v47_v2  ;;  %v114_v11 = vld [vmem:[%s746_s3] sm:$0x3] }
  0x33   :  { %274 = vmatpush1.xpose.msra.mxu1 %v46_v3  ;;  %v119_v12 = vrot.slane %v114_v11, %v118_v7 }
  0x34   :  { %353 = vmatprep.subr.mxu1 %v49_v4 }
  0x35   :  { %150 = vmatpush1.xpose.msra.mxu0 %v68_v15 }
  0x36   :  { %151 = vmatprep.subr.mxu0 %v67_v16 }
  0x39   :  { %152 = vmatpush1.xpose.msra.mxu0 %v66_v17 }
  0x3a   :  { %153 = vmatprep.subr.mxu0 %v65_v18  ;;  %v723_v18 = vsub.s32 %v213_v14, %v117_v6 }
  0x3d   :  { %154 = vmatpush1.xpose.msra.mxu0 %v64_v19 }
  0x3e   :  { %155 = vmatprep.subr.mxu0 %v63_v20 }
  0x41   :  { %156 = vmatpush1.xpose.msra.mxu0 %v62_v21 }
  0x42   :  { %157 = vmatprep.subr.mxu0 %v61_v22 }
  0x45   :  { %158 = vmatpush1.xpose.msra.mxu0 %v60_v23 }
  0x46   :  { %159 = vmatprep.subr.mxu0 %v59_v24 }
  0x49   :  { %160 = vmatpush1.xpose.msra.mxu0 %v58_v25 }
  0x4a   :  { %161 = vmatprep.subr.mxu0 %v57_v26 }
  0x4d   :  { %162 = vmatpush1.xpose.msra.mxu0 %v56_v27  ;;  %v48_v27 = vld [vmem:[#allocation2 + $0x10] sm:$0xff] }
  0x4e   :  { %163 = vmatprep.subr.mxu0 %v55_v28 }
  0x51   :  { %164 = vmatpush1.xpose.msra.mxu0 %v54_v29 }
  0x52   :  { %165 = vmatprep.subr.mxu0 %v53_v30 }
  0x55   :  { %166 = vmatpush1.xpose.msra.mxu0 %v52_v31 }
  0x56   :  { %167 = vmatprep.subr.mxu0 %v51_v32 }
  0x59   :  { %168 = vmatpush1.xpose.msra.mxu0 %v50_v33 }
  0x5a   :  { %169 = vmatprep.subr.mxu0 %v113_v34 }
  0x5d   :  { %170 = vmatpush2.xpose.msra.mxu0 %v112_v35 }
  0x5e   :  { %171 = vmatprep.subr.mxu0 %v111_v36 }
  0x61   :  { %172 = vmatpush2.xpose.msra.mxu0 %v110_v37 }
  0x62   :  { %173 = vmatprep.subr.mxu0 %v109_v38 }
  0x65   :  { %174 = vmatpush2.xpose.msra.mxu0 %v108_v39 }
  0x66   :  { %175 = vmatprep.subr.mxu0 %v107_v40 }
  0x69   :  { %176 = vmatpush2.xpose.msra.mxu0 %v106_v41 }
  0x6a   :  { %177 = vmatprep.subr.mxu0 %v105_v42 }
  0x6d   :  { %178 = vmatpush2.xpose.msra.mxu0 %v104_v43 }
  0x6e   :  { %179 = vmatprep.subr.mxu0 %v103_v44 }
  0x71   :  { %180 = vmatpush2.xpose.msra.mxu0 %v102_v45 }
  0x72   :  { %181 = vmatprep.subr.mxu0 %v101_v46  ;;  %v679_v46 = vmov 0.0  }
  0x75   :  { %182 = vmatpush2.xpose.msra.mxu0 %v100_v47 }
  0x76   :  { %183 = vmatprep.subr.mxu0 %v99_v48 }
  0x79   :  { %184 = vmatpush2.xpose.msra.mxu0 %v98_v49 }
  0x7a   :  { %185 = vmatprep.subr.mxu0 %v97_v50 }
  0x7d   :  { %186 = vmatpush2.xpose.msra.mxu0 %v96_v51 }
  0x7e   :  { %187 = vmatprep.subr.mxu0 %v95_v52 }
  0x81   :  { %188 = vmatpush2.xpose.msra.mxu0 %v94_v53 }
  0x82   :  { %189 = vmatprep.subr.mxu0 %v93_v54 }
  0x85   :  { %190 = vmatpush2.xpose.msra.mxu0 %v92_v55 }
  0x86   :  { %191 = vmatprep.subr.mxu0 %v91_v56 }
  0x89   :  { %192 = vmatpush2.xpose.msra.mxu0 %v90_v57 }
  0x8a   :  { %193 = vmatprep.subr.mxu0 %v89_v58 }
  0x8d   :  { %194 = vmatpush2.xpose.msra.mxu0 %v88_v59 }
  0x8e   :  { %195 = vmatprep.subr.mxu0 %v87_v60 }
  0x91   :  { %196 = vmatpush2.xpose.msra.mxu0 %v86_v61 }
  0x92   :  { %197 = vmatprep.subr.mxu0 %v85_v62 }
  0x95   :  { %198 = vmatpush2.xpose.msra.mxu0 %v84_v63 }
  0x96   :  { %199 = vmatprep.subr.mxu0 %v83_v0 }
  0x99   :  { %200 = vmatpush2.xpose.msra.mxu0 %v82_v1 }
  0x9c   :  { %202 = vmatmul.mubr.f32.vlgmr.msra.gmra.mxu0 %v714_v13  ;;  %v123_v13 = vrot.slane %v114_v11, %v122_v10 }
 0x15c   :  { %v203_v15 = vpop.f32.mrf.mxu0 }
 0x15d   :  { %v204_v17 = vadd.f32 %v203_v15, %v119_v12 }
 0x15e   :  { %v205_v16 = vpop.f32.mrf.mxu0 }
 0x15f   :  { %v206_v19 = vadd.f32 %v205_v16, %v123_v13 }
 0x161   :  { %v210_v20 = vcombine.low %v204_v17, %v206_v19 }
 0x163   :  { %v217_v21 = vrot.slane %v210_v20, %v723_v18 }
 0x165   :  { %v218_v22 = vcombine.high %v217_v21, %v217_v21  ;;  %v225_v23 = vrot.slane %v217_v21, %v723_v18 }
 0x167   :  { %v240_v24 = vrot.slane %v225_v23, %v122_v10  ;;  %v236_v25 = vrot.slane %v225_v23, %v118_v7  ;;  %v232_v26 = vrot.slane %v218_v22, %v723_v18 }
 0x169   :  { %307 = vmatprep.mubr.f32.mxu1 %v240_v24  ;;  %v320_v28 = vrot.slane %v232_v26, %v122_v10  ;;  %v316_v29 = vrot.slane %v232_v26, %v118_v7 }
 0x16a   :  { %308 = vmatmul.mubr.f32.vlgmr.msra.gmra.mxu1 %v236_v25 }
 0x16b   :  { %354 = vmatpush1.xpose.msra.mxu1 %v48_v27  ;;  %387 = vmatprep.mubr.f32.mxu1 %v320_v28 }
 0x16c   :  { %450 = vmatprep.subr.mxu1 %v47_v2 }
 0x16e   :  { %388 = vmatmul.mubr.f32.vlgmr.msra.gmra.mxu1 %v316_v29 }
 0x16f   :  { %451 = vmatpush1.msra.mxu1 %v46_v3  ;;  %484 = vmatprep.mubr.f32.mxu1 %v679_v46 }
 0x170   :  { %524 = vmatprep.subr.mxu1 %v49_v4 }
 0x22a   :  { %v309_v30 = vpop.f32.mrf.mxu1 }
 0x22b   :  { %v394_v31 = vsel %vm393_vm0, %v309_v30, -inf }
 0x22c   :  { %395 = vmax.xlane.f32.xlu0 %v394_v31  ;;  %v311_v32 = vpop.f32.mrf.mxu1 }
 0x22e   :  { %v389_v33 = vpop.f32.mrf.mxu1 }
 0x22f   :  { %v397_v34 = vsel %vm393_vm0, %v389_v33, -inf }
 0x230   :  { %398 = vmax.xlane.f32.xlu0 %v397_v34  ;;  %v391_v35 = vpop.f32.mrf.mxu1 }
 0x2b5   :  { %v396_v36 = vpop.xlane.xlu0 %395 }
 0x2b6   :  { %v400_v37 = vsub.f32 %v309_v30, %v396_v36 }
 0x2b8   :  { %v402_v38 = vmul.f32 1.442695, %v400_v37 }
 0x2b9   :  { %v399_v39 = vpop.xlane.xlu0 %398 }
 0x2ba   :  { %622 = vpow2.f32 %v402_v38  ;;  %v401_v40 = vsub.f32 %v389_v33, %v399_v39 }
 0x2bc   :  { %v404_v41 = vmul.f32 1.442695, %v401_v40 }
 0x2be   :  { %624 = vpow2.f32 %v404_v41 }
 0x2c7   :  { %v623_v42 = vpop.eup %622 }
 0x2c8   :  { %v406_v43 = vsel %vm393_vm0, %v623_v42, 0.0 }
 0x2c9   :  { %407 = vadd.xlane.f32.xlu1 %v406_v43 }
 0x2cb   :  { %v625_v44 = vpop.eup %624 }
 0x2cc   :  { %v409_v45 = vsel %vm393_vm0, %v625_v44, 0.0 }
 0x2cd   :  { %410 = vadd.xlane.f32.xlu1 %v409_v45 }
 0x352   :  { %v408_v47 = vpop.xlane.xlu1 %407 }
 0x353   :  { %626 = vrcp.f32 %v408_v47 }
 0x356   :  { %v411_v48 = vpop.xlane.xlu1 %410 }
 0x357   :  { %628 = vrcp.f32 %v411_v48 }
 0x360   :  { %v627_v49 = vpop.eup %626 }
 0x361   :  { %v414_v50 = vmul.f32 %v627_v49, %v623_v42 }
 0x363   :  { %614 = vmatmul.mubr.msk.f32.vlgmr.msra.gmra.mxu1 %vm416_vm1, %v414_v50 }
 0x364   :  { %v629_v51 = vpop.eup %628  ;;  %525 = vmatpush1.msra.mxu1 %v48_v27  ;;  %558 = vmatprep.mubr.f32.mxu1 %v679_v46 }
 0x365   :  { %v415_v52 = vmul.f32 %v629_v51, %v625_v44 }
 0x367   :  { %615 = vmatmul.mubr.msk.f32.vlgmr.msra.gmra.mxu1 %vm416_vm1, %v415_v52 }
 0x423   :  { %v486_v53 = vpop.f32.mrf.mxu1 }
 0x425   :  { %v488_v54 = vpop.f32.mrf.mxu1 }
 0x426   :  { %v569_v55 = vcombine.low %v486_v53, %v488_v54 }
 0x427   :  { %v560_v56 = vpop.f32.mrf.mxu1 }
 0x428   :  { %v576_v57 = vrot.slane %v569_v55, %v723_v18 }
 0x429   :  { %v562_v58 = vpop.f32.mrf.mxu1 }
 0x42a   :  { %v583_v59 = vrot.slane %v576_v57, %v723_v18  ;;  %v584_v60 = vcombine.low %v560_v56, %v562_v58 }
 0x42c   :  { %605 = vst.msk [vmem:[%s747_s4] sm:$0x3] %vm603_vm2, %v583_v59  ;;  %v591_v61 = vrot.slane %v584_v60, %v723_v18 }
 0x42e   :  { %v598_v62 = vrot.slane %v591_v61, %v723_v18 }
 0x430   :  { %606 = vst.msk [vmem:[%s747_s4 + $0x2] sm:$0x3] %vm603_vm2, %v598_v62 }
 0x431   :  { %611 = vsyncpa [#allocation3], 1 }
 0x432   :  { %612 = vsyncpa [#allocation5], 1 }

</bundles_post_ra>
